<compile_context>
chip_gen: v5e
topology: v5e:2x2
jax: 0.10.0
libtpu: 0.0.40
codegen_flags: <defaults>
</compile_context>

<pallas_src>
import jax
import jax.numpy as jnp
from jax.experimental import pallas as pl
from jax.experimental.pallas import tpu as pltpu


def _round_up(v, m):
    return ((v + m - 1) // m) * m


def _sublane_multiple(dtype):
    # f32 -> 8 rows per vreg, bf16 -> 16, int8/fp8 -> 32.
    return max(8, 32 // jnp.dtype(dtype).itemsize)


# Contract the last dim of x [tm, K] with the last dim of W [tn, K]:
# out[m, n] = sum_k x[m, k] * W[n, k]   (torch weight layout, no transpose).
_DN = (((1,), (1,)), ((), ()))


def _single_pass_kernel(x_ref, w_ref, b_ref, out_ref):
    """Whole K axis in one block: out = x @ W.T + b.  No scratch, no pl.when."""
    acc = jax.lax.dot_general(
        x_ref[...], w_ref[...], dimension_numbers=_DN,
        preferred_element_type=jnp.float32)
    out_ref[...] = (acc + b_ref[...].astype(jnp.float32)).astype(out_ref.dtype)


def _split_k_kernel(x_ref, w_ref, b_ref, out_ref, acc_ref):
    """K split over the innermost grid axis with a resident f32 accumulator."""
    k = pl.program_id(2)

    @pl.when(k == 0)
    def _():
        acc_ref[...] = jnp.zeros_like(acc_ref)

    acc_ref[...] += jax.lax.dot_general(
        x_ref[...], w_ref[...], dimension_numbers=_DN,
        preferred_element_type=jnp.float32)

    @pl.when(k == pl.num_programs(2) - 1)
    def _():
        out_ref[...] = (acc_ref[...] +
                        b_ref[...].astype(jnp.float32)).astype(out_ref.dtype)


def linear_readout(x, weight, bias, *, tm_max=256, tn_max=512, tk_max=512,
                   single_pass_vmem_bytes=20 * 1024 * 1024):
    """y = x @ weight.T + bias  (torch nn.Linear semantics).

    x:      [..., in_dim]
    weight: [out_dim, in_dim]   (torch layout; consumed as-is, never transposed)
    bias:   [out_dim]
    returns [..., out_dim] in x.dtype
    """
    orig_lead = x.shape[:-1]
    K = x.shape[-1]
    N, Kw = weight.shape
    assert Kw == K and bias.shape == (N,)

    x2 = x.reshape(-1, K)
    M = x2.shape[0]
    b2 = bias.reshape(1, N)
    out_dtype = x.dtype

    x_isz = jnp.dtype(x.dtype).itemsize
    w_isz = jnp.dtype(weight.dtype).itemsize
    o_isz = jnp.dtype(out_dtype).itemsize
    b_isz = jnp.dtype(bias.dtype).itemsize
    sub = _sublane_multiple(x.dtype)

    # ---- M tiling: full extent when it fits (no masked rows); otherwise tiles
    # that divide M tightly to avoid round_up(M, tm) overshoot.
    if M <= tm_max:
        tm = M
    else:
        tm = _round_up(pl.cdiv(M, pl.cdiv(M, tm_max)), sub)
    grid_m = pl.cdiv(M, tm)

    # ---- N tiling: output lane dim must be a multiple of 128 (or the full
    # extent).  Prefer 256-multiples for the 256-wide v6e/v7x MXU.
    if N <= 128:
        tn = N
    else:
        tn = _round_up(pl.cdiv(N, pl.cdiv(N, tn_max)), 128)
        if tn % 256 and _round_up(tn, 256) <= _round_up(N, 128):
            tn = _round_up(tn, 256)
    grid_n = pl.cdiv(N, tn)

    # ---- v7x: 2 TensorCores shard the "parallel" axes; make sure at least
    # one axis has >= 2 blocks so a core isn't idle.
    if grid_m == 1 and grid_n == 1 and N >= 256:
        tn = _round_up(pl.cdiv(N, 2), 128)
        grid_n = pl.cdiv(N, tn)

    flops = 2 * M * K * N

    # Double-buffered VMEM working set if the whole K axis is one block.
    single_pass_bytes = 2 * (tm * K * x_isz + tn * K * w_isz
                             + tm * tn * o_isz + tn * b_isz)

    if single_pass_bytes <= single_pass_vmem_bytes:
        # ---- Common readout path: 2-D grid, tk == K.  No accumulator scratch,
        # no init/finalize branches, no K padding, and x / W are each streamed
        # from HBM only as often as the opposing tile count requires.
        grid = (grid_m, grid_n)
        bytes_accessed = (grid_n * M * K * x_isz + grid_m * N * K * w_isz
                          + M * N * o_isz + N * b_isz)
        vmem_limit = int(min(max(single_pass_bytes + (16 << 20), 32 << 20),
                             64 << 20))
        out = pl.pallas_call(
            _single_pass_kernel,
            out_shape=jax.ShapeDtypeStruct((M, N), out_dtype),
            grid_spec=pltpu.PrefetchScalarGridSpec(
                num_scalar_prefetch=0,
                grid=grid,
                in_specs=[
                    pl.BlockSpec((tm, K), lambda i, j: (i, 0)),   # x tile
                    pl.BlockSpec((tn, K), lambda i, j: (j, 0)),   # W (torch layout)
                    pl.BlockSpec((1, tn), lambda i, j: (0, j)),   # bias
                ],
                out_specs=pl.BlockSpec((tm, tn), lambda i, j: (i, j)),
            ),
            compiler_params=pltpu.CompilerParams(
                dimension_semantics=("parallel", "parallel"),
                vmem_limit_bytes=vmem_limit,
            ),
            cost_estimate=pl.CostEstimate(
                flops=flops, transcendentals=0, bytes_accessed=bytes_accessed),
        )(x2, weight, b2)
        return out.reshape(*orig_lead, N)

    # ---- Split-K fallback (very large in_dim): 3-D grid with resident f32
    # accumulator.  Only here do we zero-pad along K (both operands, so OOB
    # garbage can never reach the reduction); M / N are never padded.
    tk = _round_up(pl.cdiv(K, pl.cdiv(K, tk_max)), 128)
    grid_k = pl.cdiv(K, tk)
    Kp = grid_k * tk
    if Kp != K:
        x2 = jnp.pad(x2, ((0, 0), (0, Kp - K)))
        weight = jnp.pad(weight, ((0, 0), (0, Kp - K)))

    grid = (grid_m, grid_n, grid_k)
    bytes_accessed = (grid_n * M * Kp * x_isz + grid_m * N * Kp * w_isz
                      + M * N * o_isz + N * b_isz)
    work_bytes = (2 * (tm * tk * x_isz + tn * tk * w_isz + tm * tn * o_isz
                       + tn * b_isz) + tm * tn * 4)
    vmem_limit = int(min(max(work_bytes + (16 << 20), 32 << 20), 64 << 20))

    out = pl.pallas_call(
        _split_k_kernel,
        out_shape=jax.ShapeDtypeStruct((M, N), out_dtype),
        grid_spec=pltpu.PrefetchScalarGridSpec(
            num_scalar_prefetch=0,
            grid=grid,
            in_specs=[
                pl.BlockSpec((tm, tk), lambda i, j, k: (i, k)),   # x tile
                pl.BlockSpec((tn, tk), lambda i, j, k: (j, k)),   # W (torch layout)
                pl.BlockSpec((1, tn), lambda i, j, k: (0, j)),    # bias
            ],
            out_specs=pl.BlockSpec((tm, tn), lambda i, j, k: (i, j)),
            scratch_shapes=[pltpu.VMEM((tm, tn), jnp.float32)],
        ),
        compiler_params=pltpu.CompilerParams(
            dimension_semantics=("parallel", "parallel", "arbitrary"),
            vmem_limit_bytes=vmem_limit,
        ),
        cost_estimate=pl.CostEstimate(
            flops=flops, transcendentals=0, bytes_accessed=bytes_accessed),
    )(x2, weight, b2)
    return out.reshape(*orig_lead, N)


if __name__ == "__main__":
    key = jax.random.PRNGKey(0)
    ks = jax.random.split(key, 9)

    # Tolerances below cover the bf16-operand MXU passes that TPU matmuls may
    # use for f32 inputs at default precision (references use Precision.HIGHEST).

    # ---- Test 1: shapes implied by the module: batch=2, seq=8, in=32 -> out=16.
    # Single-pass path, single-tile grid.
    B, S, IN, OUT = 2, 8, 32, 16
    x = jax.random.normal(ks[0], (B, S, IN), dtype=jnp.float32)
    lim = 1.0 / (IN ** 0.5)
    weight = jax.random.uniform(ks[1], (OUT, IN), jnp.float32, -lim, lim)  # torch layout
    bias = jax.random.uniform(ks[2], (OUT,), jnp.float32, -lim, lim)

    y = jax.block_until_ready(linear_readout(x, weight, bias))
    ref = jnp.dot(x, weight.T, precision=jax.lax.Precision.HIGHEST) + bias
    assert y.shape == (B, S, OUT)
    assert jnp.allclose(y, ref, atol=2e-2, rtol=2e-2), "mismatch (test 1)"

    # ---- Test 2: force the split-K fallback (3 K-steps) to exercise the
    # resident accumulator / pl.when init-finalize path.
    M2, IN2, OUT2 = 16, 384, 24
    x2 = jax.random.normal(ks[3], (M2, IN2), dtype=jnp.float32)
    lim2 = 1.0 / (IN2 ** 0.5)
    weight2 = jax.random.uniform(ks[4], (OUT2, IN2), jnp.float32, -lim2, lim2)
    bias2 = jax.random.uniform(ks[5], (OUT2,), jnp.float32, -lim2, lim2)

    y2 = jax.block_until_ready(
        linear_readout(x2, weight2, bias2, tk_max=128, single_pass_vmem_bytes=0))
    ref2 = jnp.dot(x2, weight2.T, precision=jax.lax.Precision.HIGHEST) + bias2
    assert y2.shape == (M2, OUT2)
    assert jnp.allclose(y2, ref2, atol=3e-2, rtol=3e-2), "mismatch (test 2)"

    # ---- Test 3: bf16 operand path + multi-N-tile grid (v7x two-core split).
    M3, IN3, OUT3 = 16, 128, 256
    x3 = jax.random.normal(ks[6], (M3, IN3), dtype=jnp.bfloat16)
    lim3 = 1.0 / (IN3 ** 0.5)
    weight3 = jax.random.uniform(ks[7], (OUT3, IN3), jnp.bfloat16, -lim3, lim3)
    bias3 = jax.random.uniform(ks[8], (OUT3,), jnp.bfloat16, -lim3, lim3)

    y3 = jax.block_until_ready(linear_readout(x3, weight3, bias3))
    ref3 = (jnp.dot(x3.astype(jnp.float32), weight3.T.astype(jnp.float32),
                    precision=jax.lax.Precision.HIGHEST)
            + bias3.astype(jnp.float32))
    assert y3.shape == (M3, OUT3)
    assert jnp.allclose(y3.astype(jnp.float32), ref3, atol=5e-2, rtol=5e-2), \
        "mismatch (test 3)"

    print("KERNEL_OK")
</pallas_src>

<mosaic_0001>
module attributes {stable_mosaic.version = 11 : i64} {
  func.func @_single_pass_kernel(%arg0: i32, %arg1: i32, %arg2: memref<16x32xf32, #tpu.memory_space<vmem>>, %arg3: memref<16x32xf32, #tpu.memory_space<vmem>>, %arg4: memref<1x16xf32, #tpu.memory_space<vmem>>, %arg5: memref<16x16xf32, #tpu.memory_space<vmem>>) attributes {dimension_semantics = [#tpu.dimension_semantics<parallel>, #tpu.dimension_semantics<parallel>], iteration_bounds = array<i64: 1, 1>, scalar_prefetch = 0 : i64, scratch_operands = 0 : i64, tpu.core_type = #tpu.core_type<tc>, window_params = [{transform_indices = @transform_0, window_bounds = array<i64: 16, 32>}, {transform_indices = @transform_1, window_bounds = array<i64: 16, 32>}, {transform_indices = @transform_2, window_bounds = array<i64: 1, 16>}, {transform_indices = @transform_3, window_bounds = array<i64: 16, 16>}]} {
    %c0 = arith.constant 0 : index
    %c0_0 = arith.constant 0 : index
    %0 = vector.load %arg2[%c0, %c0_0] : memref<16x32xf32, #tpu.memory_space<vmem>>, vector<16x32xf32>
    %c0_1 = arith.constant 0 : index
    %c0_2 = arith.constant 0 : index
    %1 = vector.load %arg3[%c0_1, %c0_2] : memref<16x32xf32, #tpu.memory_space<vmem>>, vector<16x32xf32>
    %cst = arith.constant dense<0.000000e+00> : vector<16x16xf32>
    %2 = tpu.matmul %0, %1, %cst {dimension_numbers = #tpu.dot_dimension_numbers<[1], [1], [0], [0], [0, 0, 1, 0], [], []>} : vector<16x32xf32>, vector<16x32xf32>, vector<16x16xf32> -> vector<16x16xf32>
    %c0_3 = arith.constant 0 : index
    %c0_4 = arith.constant 0 : index
    %3 = vector.load %arg4[%c0_3, %c0_4] : memref<1x16xf32, #tpu.memory_space<vmem>>, vector<1x16xf32>
    %4 = vector.broadcast %3 : vector<1x16xf32> to vector<16x16xf32>
    %5 = arith.addf %2, %4 : vector<16x16xf32>
    %c0_5 = arith.constant 0 : index
    %c0_6 = arith.constant 0 : index
    %6 = vector.load %arg5[%c0_5, %c0_6] : memref<16x16xf32, #tpu.memory_space<vmem>>, vector<16x16xf32>
    tpu.vector_store %arg5[%c0_5, %c0_6], %5 {strides = array<i32>} : memref<16x16xf32, #tpu.memory_space<vmem>>, vector<16x16xf32>,
    return
  }
  func.func @transform_0(%arg0: i32, %arg1: i32) -> (i32, i32) {
    %c0_i32 = arith.constant 0 : i32
    %c0_i32_0 = arith.constant 0 : i32
    return %arg0, %c0_i32 : i32, i32
  }
  func.func @transform_1(%arg0: i32, %arg1: i32) -> (i32, i32) {
    %c0_i32 = arith.constant 0 : i32
    %c0_i32_0 = arith.constant 0 : i32
    return %arg1, %c0_i32 : i32, i32
  }
  func.func @transform_2(%arg0: i32, %arg1: i32) -> (i32, i32) {
    %c0_i32 = arith.constant 0 : i32
    %c0_i32_0 = arith.constant 0 : i32
    return %c0_i32, %arg1 : i32, i32
  }
  func.func @transform_3(%arg0: i32, %arg1: i32) -> (i32, i32) {
    %c0_i32 = arith.constant 0 : i32
    return %arg0, %arg1 : i32, i32
  }
}

</mosaic_0001>

<bundles_post_ra>
// kernel: tpu_custom_call.1
= control target key start
LH: loop header
LB: loop body
LE: loop exit
PB: predicated region body
PF: predicated region fallthrough
CT: control target
= control target key end

     0   :  { %8 = vsyncpa [#allocation3], 0  ;;  %s250_s0 = inlined_call_operand.hbm [shape: f32[16,32], index: 0, kind: input, shape index: {}]   ;;  %s251_s1 = inlined_call_operand.hbm [shape: f32[16,32], index: 1, kind: input, shape index: {}]   ;;  %s252_s2 = inlined_call_operand.vmem [shape: f32[1,16], index: 2, kind: input, shape index: {}]   ;;  %s253_s3 = inlined_call_operand.hbm [shape: f32[16,16], index: 3, kind: output, shape index: {}]  }
   0x1   :  { %9 = vsyncpa [#allocation6], 0 }
   0x2   :  { %10 = vsyncpa [#allocation4], 0  ;;  %s15_s14 = sshll.u32 %s250_s0, 4  ;;  %s204_s15 = smov [#allocation2]   ;;  %s16_s14 = int_to_ptr.hbm [resolvable:$true] %s15_s14 }
   0x3   :  { %s17_s16 = sshll.u32 %s204_s15, 4  ;;  %s28_s19 = sshll.u32 %s251_s1, 4  ;;  %s18_s16 = int_to_ptr.vmem [resolvable:$true] %s17_s16  ;;  %s29_s19 = int_to_ptr.hbm [resolvable:$true] %s28_s19 }
   0x4   :  { %s205_s20 = smov 128   ;;  %s206_s21 = smov 8  }
   0x5   :  { %23 = dma.hbm_to_vmem [thread:$0]  %s16_s14, 256, %s18_s16, [#allocation3], %s205_s20, %s205_s20, %s206_s21  }
   0x6   :  { %s207_s22 = smov [#allocation5]  }
   0x7   :  { %s30_s23 = sshll.u32 %s207_s22, 4  ;;  %s31_s23 = int_to_ptr.vmem [resolvable:$true] %s30_s23 }
   0x8   :  { %36 = dma.hbm_to_vmem [thread:$0]  %s29_s19, 256, %s31_s23, [#allocation6], %s205_s20, %s205_s20, %s206_s21  }
   0x9   :  { %198 = dma.done.wait [#allocation3], 256  }
   0xa   :  { %199 = vsyncadd [#allocation3], 4294967040 }
   0xb   :  { %200 = dma.done.wait [#allocation6], 256  }
   0xc   :  { %201 = vsyncadd [#allocation6], 4294967040  ;;  %vm55_vm0 = vcmask 261120   ;;  %v50_v0 = vld [vmem:[#allocation5 + $0x8] sm:$0xff]  ;;  %v49_v1 = vld [vmem:[#allocation5] sm:$0xff]  ;;  %s208_s24 = smov [#allocation7]  }
   0xd   :  { %114 = vmatpush.xpose.msk.msra.mxu0 %vm55_vm0, %v50_v0  ;;  %118 = vmatpush.xpose.msk.msra.mxu1 %vm55_vm0, %v50_v0  ;;  %v47_v2 = vld [vmem:[#allocation2] sm:$0xff]  ;;  %v48_v3 = vld [vmem:[#allocation2 + $0x8] sm:$0xff]  ;;  %s98_s25 = sshll.u32 %s208_s24, 4  ;;  %s100_s28 = sshll.u32 %s253_s3, 4  ;;  %vm91_vm1 = vcmask 130048   ;;  %s99_s25 = int_to_ptr.vmem [resolvable:$true] %s98_s25  ;;  %s101_s28 = int_to_ptr.hbm [resolvable:$true] %s100_s28 }
   0xe   :  { %v125_v4 = vld [vmem:[%s252_s2] ss:$0 sm:$0xff] }
  0x11   :  { %115 = vmatpush.xpose.msk.msra.mxu0 %vm55_vm0, %v49_v1  ;;  %119 = vmatpush.xpose.msk.msra.mxu1 %vm55_vm0, %v49_v1 }
  0x14   :  { %116 = vmatmul.msk.f32.vlgmr.msra.gmra.mxu0 %vm55_vm0, %v47_v2  ;;  %117 = vmatmul.msk.f32.vlgmr.msra.gmra.mxu1 %vm55_vm0, %v48_v3 }
  0x91   :  { %v85_v5 = vpop.f32.mrf.mxu0  ;;  %v88_v6 = vpop.f32.mrf.mxu1 }
  0x92   :  { %v86_v7 = vadd.f32 %v125_v4, %v85_v5  ;;  %v89_v8 = vadd.f32 %v125_v4, %v88_v6 }
  0x94   :  { %92 = vst.msk [vmem:[#allocation7] sm:$0xff] %vm91_vm1, %v86_v7 }
  0x95   :  { %93 = vst.msk [vmem:[#allocation7 + $0x8] sm:$0xff] %vm91_vm1, %v89_v8 }
  0x96   :  { %106 = dma.vmem_to_hbm [thread:$0]  %s99_s25, 256, %s101_s28, [#allocation4], %s205_s20, %s205_s20, %s206_s21  }
  0x97   :  { %202 = dma.done.wait [#allocation4], 256  }
  0x98   :  { %203 = vsyncadd [#allocation4], 4294967040 }
  0x99   :  { %111 = vsyncpa [#allocation3], 1 }
  0x9a   :  { %112 = vsyncpa [#allocation6], 1 }
  0x9b   :  { %113 = vsyncpa [#allocation4], 1 }

</bundles_post_ra>
